<compile_context>
chip_gen: v5e
topology: v5e:2x2
jax: 0.10.0
libtpu: 0.0.40
codegen_flags: <defaults>
</compile_context>

<pallas_src>
import functools

import jax
import jax.numpy as jnp
from jax import lax
from jax.experimental import pallas as pl
from jax.experimental.pallas import tpu as pltpu

_DIMS_TAIL = (64, 32, 16, 8, 4, 2)   # layer output sizes


def _round_up(x, m):
    return (x + m - 1) // m * m


def _mlp_kernel(x_ref, w1_ref, wmid_ref, wlast_ref, bh_ref, bo_ref, o_ref):
    """Fused MLP forward on one (TB, F) batch tile.

    x_ref:     (TB, F)     bf16  input rows
    w1_ref:    (F, 64)     bf16  layer-1 weight (BN scale folded)
    wmid_ref:  (4, 64, 64) bf16  layers 2-5 weights, zero padded
    wlast_ref: (8, 64)     bf16  output weight, transposed [out, in], padded
    bh_ref:    (5, 64)     f32   hidden biases (BN shift folded), padded
    bo_ref:    (8, 1)      f32   output bias column, padded
    o_ref:     (8, TB)     f32   transposed logits (real rows 0..1)
    """
    # Hidden layer 1: (TB, F) @ (F, 64) -> f32 accumulate.
    h = jnp.dot(x_ref[...], w1_ref[...], preferred_element_type=jnp.float32)
    h = jnp.maximum(h + bh_ref[0:1, :], 0.0)

    # Hidden layers 2-5 (padded lanes stay exactly zero).
    for k in range(4):
        z = jnp.dot(h.astype(jnp.bfloat16), wmid_ref[k],
                    preferred_element_type=jnp.float32)
        h = jnp.maximum(z + bh_ref[k + 1:k + 2, :], 0.0)

    # Output layer, computed transposed: contract feature dims of (8, 64) and
    # (TB, 64) -> lane-dense (8, TB) slab, then per-row bias.
    zt = lax.dot_general(
        wlast_ref[...], h.astype(jnp.bfloat16),
        dimension_numbers=(((1,), (1,)), ((), ())),
        preferred_element_type=jnp.float32)
    o_ref[...] = zt + bo_ref[...]


def _pack_params(params, input_size):
    """Fold BN affine into Linear weights/biases; pack into padded bf16 slabs."""
    dims = [input_size] + list(_DIMS_TAIL)

    # Layer 1: fan_out is exactly 64, no padding needed.
    s1, t1 = params["s1"], params["t1"]
    w1 = (params["w1"] * s1).astype(jnp.bfloat16)                 # (F, 64)
    bh = jnp.zeros((5, 64), jnp.float32)
    bh = bh.at[0, :].set((params["b1"] * s1 + t1).reshape(-1))

    # Layers 2-5: zero-padded into a (4, 64, 64) slab.
    wmid = jnp.zeros((4, 64, 64), jnp.float32)
    for k in range(2, 6):
        fan_in, fan_out = dims[k - 1], dims[k]
        s, t = params[f"s{k}"], params[f"t{k}"]
        wmid = wmid.at[k - 2, :fan_in, :fan_out].set(params[f"w{k}"] * s)
        bh = bh.at[k - 1, :fan_out].set((params[f"b{k}"] * s + t).reshape(-1))
    wmid = wmid.astype(jnp.bfloat16)

    # Output layer (4 -> 2): stored transposed [out, in], padded to (8, 64).
    wlast = jnp.zeros((8, 64), jnp.float32)
    wlast = wlast.at[:2, :4].set(params["w6"].T)
    wlast = wlast.astype(jnp.bfloat16)

    bo = jnp.zeros((8, 1), jnp.float32)
    bo = bo.at[:2, 0].set(params["b6"].reshape(-1))
    return w1, wmid, wlast, bh, bo


def _choose_tb(B, max_tb):
    """Rows per grid step: big tiles, aligned, >=2 steps once B is sizeable."""
    n_steps = max(1, pl.cdiv(B, max_tb))
    if B >= 256:
        n_steps = max(n_steps, 2)        # let v7x's 2nd TensorCore pick up work
    tb = pl.cdiv(B, n_steps)
    if n_steps > 1:
        tb = _round_up(tb, 128)          # (8, TB) out block needs TB % 128 == 0
    else:
        tb = _round_up(tb, 16)           # bf16 (16, 128) sublane tile
    return max(tb, 16)


def neural_network_forward(x, params, *, max_block_b=4096):
    """Run the fused MLP. x: (B, input_size) f32. Returns (B, 2) f32."""
    B, F = x.shape
    out_dim = _DIMS_TAIL[-1]

    w1, wmid, wlast, bh, bo = _pack_params(params, F)

    TB = _choose_tb(B, max_block_b)
    B_pad = _round_up(B, TB)
    nb = B_pad // TB

    # bf16 input, row-padded only (no lane padding, no 128-wide HBM slab).
    x_bf = x.astype(jnp.bfloat16)
    if B_pad != B:
        x_bf = jnp.pad(x_bf, ((0, B_pad - B), (0, 0)))

    flops = 2 * B_pad * (F * 64 + 4 * 64 * 64 + 64 * 8)       # padded MXU work
    bytes_accessed = (2 * x_bf.size
                      + 2 * (w1.size + wmid.size + wlast.size)
                      + 4 * (bh.size + bo.size)
                      + 4 * 8 * B_pad)

    out_t = pl.pallas_call(
        _mlp_kernel,
        out_shape=jax.ShapeDtypeStruct((8, B_pad), jnp.float32),
        grid=(nb,),
        in_specs=[
            pl.BlockSpec((TB, F), lambda i: (i, 0)),            # x: tiled over batch
            pl.BlockSpec((F, 64), lambda i: (0, 0)),            # layer-1 weight (resident)
            pl.BlockSpec((4, 64, 64), lambda i: (0, 0, 0)),     # layers 2-5 weights
            pl.BlockSpec((8, 64), lambda i: (0, 0)),            # output weight (transposed)
            pl.BlockSpec((5, 64), lambda i: (0, 0)),            # hidden biases (BN folded)
            pl.BlockSpec((8, 1), lambda i: (0, 0)),             # output bias column
        ],
        out_specs=pl.BlockSpec((8, TB), lambda i: (0, i)),
        compiler_params=pltpu.CompilerParams(
            dimension_semantics=("parallel",)),
        cost_estimate=pl.CostEstimate(
            flops=flops, transcendentals=0, bytes_accessed=bytes_accessed),
    )(x_bf, w1, wmid, wlast, bh, bo)

    return out_t[:out_dim, :B].T


def init_params(key, input_size):
    """Deterministic parameter init mimicking PyTorch defaults (eval mode).

    nn.Linear: W, b ~ U(-1/sqrt(fan_in), 1/sqrt(fan_in))
    nn.BatchNorm1d: gamma=1, beta=0, running_mean=0, running_var=1, eps=1e-5
    """
    dims = [input_size] + list(_DIMS_TAIL)
    params = {}
    eps = 1e-5
    for i in range(6):
        fan_in, fan_out = dims[i], dims[i + 1]
        key, kw, kb = jax.random.split(key, 3)
        bound = 1.0 / jnp.sqrt(jnp.float32(fan_in))
        # stored as [in, out] = transpose of PyTorch's [out, in]
        params[f"w{i + 1}"] = jax.random.uniform(
            kw, (fan_in, fan_out), jnp.float32, -bound, bound)
        params[f"b{i + 1}"] = jax.random.uniform(
            kb, (1, fan_out), jnp.float32, -bound, bound)
        if i < 5:
            gamma = jnp.ones((1, fan_out), jnp.float32)
            beta = jnp.zeros((1, fan_out), jnp.float32)
            running_mean = jnp.zeros((1, fan_out), jnp.float32)
            running_var = jnp.ones((1, fan_out), jnp.float32)
            scale = gamma / jnp.sqrt(running_var + eps)
            shift = beta - running_mean * scale
            params[f"s{i + 1}"] = scale
            params[f"t{i + 1}"] = shift
    return params


def _reference_forward(x, params):
    """Pure-JAX f32 reference (eval mode) for a sanity check."""
    h = x
    for k in range(1, 6):
        h = h @ params[f"w{k}"] + params[f"b{k}"]
        h = h * params[f"s{k}"] + params[f"t{k}"]
        h = jnp.maximum(h, 0.0)
    return h @ params["w6"] + params["b6"]


if __name__ == "__main__":
    key = jax.random.PRNGKey(0)
    k_params, k_x1, k_x2 = jax.random.split(key, 3)

    input_size = 32
    params = init_params(k_params, input_size)

    fwd = jax.jit(functools.partial(neural_network_forward, params=params))

    # Small batch: single grid step.
    x_small = jax.random.normal(k_x1, (8, input_size), jnp.float32)
    out_small = jax.block_until_ready(fwd(x_small))
    ref_small = _reference_forward(x_small, params)
    assert out_small.shape == (8, 2), out_small.shape
    assert jnp.allclose(out_small, ref_small, atol=5e-2, rtol=5e-2), \
        "small-batch mismatch vs reference"

    # Non-multiple batch: exercises multi-step grid + row-padding path.
    x_big = jax.random.normal(k_x2, (300, input_size), jnp.float32)
    out_big = jax.block_until_ready(fwd(x_big))
    ref_big = _reference_forward(x_big, params)
    assert out_big.shape == (300, 2), out_big.shape
    assert jnp.allclose(out_big, ref_big, atol=5e-2, rtol=5e-2), \
        "large-batch mismatch vs reference"

    print("KERNEL_OK")
</pallas_src>

<mosaic_0001>
module attributes {stable_mosaic.version = 11 : i64} {
  func.func @_mlp_kernel(%arg0: i32, %arg1: memref<16x32xbf16, #tpu.memory_space<vmem>>, %arg2: memref<32x64xbf16, #tpu.memory_space<vmem>>, %arg3: memref<4x64x64xbf16, #tpu.memory_space<vmem>>, %arg4: memref<8x64xbf16, #tpu.memory_space<vmem>>, %arg5: memref<5x64xf32, #tpu.memory_space<vmem>>, %arg6: memref<8x1xf32, #tpu.memory_space<vmem>>, %arg7: memref<8x16xf32, #tpu.memory_space<vmem>>) attributes {dimension_semantics = [#tpu.dimension_semantics<parallel>], iteration_bounds = array<i64: 1>, scalar_prefetch = 0 : i64, scratch_operands = 0 : i64, tpu.core_type = #tpu.core_type<tc>, window_params = [{transform_indices = @transform_0, window_bounds = array<i64: 16, 32>}, {pipeline_mode = #tpu.pipeline_mode<synchronous>, transform_indices = @transform_1, window_bounds = array<i64: 32, 64>}, {pipeline_mode = #tpu.pipeline_mode<synchronous>, transform_indices = @transform_2, window_bounds = array<i64: 4, 64, 64>}, {pipeline_mode = #tpu.pipeline_mode<synchronous>, transform_indices = @transform_3, window_bounds = array<i64: 8, 64>}, {pipeline_mode = #tpu.pipeline_mode<synchronous>, transform_indices = @transform_4, window_bounds = array<i64: 5, 64>}, {pipeline_mode = #tpu.pipeline_mode<synchronous>, transform_indices = @transform_5, window_bounds = array<i64: 8, 1>}, {transform_indices = @transform_6, window_bounds = array<i64: 8, 16>}]} {
    %c0 = arith.constant 0 : index
    %c0_0 = arith.constant 0 : index
    %0 = vector.load %arg1[%c0, %c0_0] : memref<16x32xbf16, #tpu.memory_space<vmem>>, vector<16x32xbf16>
    %c0_1 = arith.constant 0 : index
    %c0_2 = arith.constant 0 : index
    %1 = vector.load %arg2[%c0_1, %c0_2] : memref<32x64xbf16, #tpu.memory_space<vmem>>, vector<32x64xbf16>
    %cst = arith.constant dense<0.000000e+00> : vector<16x64xf32>
    %2 = tpu.matmul %0, %1, %cst {dimension_numbers = #tpu.dot_dimension_numbers<[1], [0], [0], [1], [0, 0, 1, 1], [], []>} : vector<16x32xbf16>, vector<32x64xbf16>, vector<16x64xf32> -> vector<16x64xf32>
    %c0_3 = arith.constant 0 : index
    %c0_4 = arith.constant 0 : index
    %3 = vector.load %arg5[%c0_3, %c0_4] : memref<5x64xf32, #tpu.memory_space<vmem>>, vector<1x64xf32>
    %4 = vector.broadcast %3 : vector<1x64xf32> to vector<16x64xf32>
    %5 = arith.addf %2, %4 : vector<16x64xf32>
    %cst_5 = arith.constant 0.000000e+00 : f32
    %6 = vector.broadcast %cst_5 : f32 to vector<16x64xf32>
    %7 = arith.maximumf %5, %6 : vector<16x64xf32>
    %8 = arith.truncf %7 : vector<16x64xf32> to vector<16x64xbf16>
    %c0_6 = arith.constant 0 : index
    %c0_7 = arith.constant 0 : index
    %c0_8 = arith.constant 0 : index
    %9 = vector.load %arg3[%c0_6, %c0_7, %c0_8] : memref<4x64x64xbf16, #tpu.memory_space<vmem>>, vector<1x64x64xbf16>
    %10 = vector.shape_cast %9 : vector<1x64x64xbf16> to vector<64x64xbf16>
    %cst_9 = arith.constant dense<0.000000e+00> : vector<16x64xf32>
    %11 = tpu.matmul %8, %10, %cst_9 {dimension_numbers = #tpu.dot_dimension_numbers<[1], [0], [0], [1], [0, 0, 1, 1], [], []>} : vector<16x64xbf16>, vector<64x64xbf16>, vector<16x64xf32> -> vector<16x64xf32>
    %c1 = arith.constant 1 : index
    %c0_10 = arith.constant 0 : index
    %12 = vector.load %arg5[%c1, %c0_10] : memref<5x64xf32, #tpu.memory_space<vmem>>, vector<1x64xf32>
    %13 = vector.broadcast %12 : vector<1x64xf32> to vector<16x64xf32>
    %14 = arith.addf %11, %13 : vector<16x64xf32>
    %cst_11 = arith.constant 0.000000e+00 : f32
    %15 = vector.broadcast %cst_11 : f32 to vector<16x64xf32>
    %16 = arith.maximumf %14, %15 : vector<16x64xf32>
    %17 = arith.truncf %16 : vector<16x64xf32> to vector<16x64xbf16>
    %c1_12 = arith.constant 1 : index
    %c0_13 = arith.constant 0 : index
    %c0_14 = arith.constant 0 : index
    %18 = vector.load %arg3[%c1_12, %c0_13, %c0_14] : memref<4x64x64xbf16, #tpu.memory_space<vmem>>, vector<1x64x64xbf16>
    %19 = vector.shape_cast %18 : vector<1x64x64xbf16> to vector<64x64xbf16>
    %cst_15 = arith.constant dense<0.000000e+00> : vector<16x64xf32>
    %20 = tpu.matmul %17, %19, %cst_15 {dimension_numbers = #tpu.dot_dimension_numbers<[1], [0], [0], [1], [0, 0, 1, 1], [], []>} : vector<16x64xbf16>, vector<64x64xbf16>, vector<16x64xf32> -> vector<16x64xf32>
    %c2 = arith.constant 2 : index
    %c0_16 = arith.constant 0 : index
    %21 = vector.load %arg5[%c2, %c0_16] : memref<5x64xf32, #tpu.memory_space<vmem>>, vector<1x64xf32>
    %22 = vector.broadcast %21 : vector<1x64xf32> to vector<16x64xf32>
    %23 = arith.addf %20, %22 : vector<16x64xf32>
    %cst_17 = arith.constant 0.000000e+00 : f32
    %24 = vector.broadcast %cst_17 : f32 to vector<16x64xf32>
    %25 = arith.maximumf %23, %24 : vector<16x64xf32>
    %26 = arith.truncf %25 : vector<16x64xf32> to vector<16x64xbf16>
    %c2_18 = arith.constant 2 : index
    %c0_19 = arith.constant 0 : index
    %c0_20 = arith.constant 0 : index
    %27 = vector.load %arg3[%c2_18, %c0_19, %c0_20] : memref<4x64x64xbf16, #tpu.memory_space<vmem>>, vector<1x64x64xbf16>
    %28 = vector.shape_cast %27 : vector<1x64x64xbf16> to vector<64x64xbf16>
    %cst_21 = arith.constant dense<0.000000e+00> : vector<16x64xf32>
    %29 = tpu.matmul %26, %28, %cst_21 {dimension_numbers = #tpu.dot_dimension_numbers<[1], [0], [0], [1], [0, 0, 1, 1], [], []>} : vector<16x64xbf16>, vector<64x64xbf16>, vector<16x64xf32> -> vector<16x64xf32>
    %c3 = arith.constant 3 : index
    %c0_22 = arith.constant 0 : index
    %30 = vector.load %arg5[%c3, %c0_22] : memref<5x64xf32, #tpu.memory_space<vmem>>, vector<1x64xf32>
    %31 = vector.broadcast %30 : vector<1x64xf32> to vector<16x64xf32>
    %32 = arith.addf %29, %31 : vector<16x64xf32>
    %cst_23 = arith.constant 0.000000e+00 : f32
    %33 = vector.broadcast %cst_23 : f32 to vector<16x64xf32>
    %34 = arith.maximumf %32, %33 : vector<16x64xf32>
    %35 = arith.truncf %34 : vector<16x64xf32> to vector<16x64xbf16>
    %c3_24 = arith.constant 3 : index
    %c0_25 = arith.constant 0 : index
    %c0_26 = arith.constant 0 : index
    %36 = vector.load %arg3[%c3_24, %c0_25, %c0_26] : memref<4x64x64xbf16, #tpu.memory_space<vmem>>, vector<1x64x64xbf16>
    %37 = vector.shape_cast %36 : vector<1x64x64xbf16> to vector<64x64xbf16>
    %cst_27 = arith.constant dense<0.000000e+00> : vector<16x64xf32>
    %38 = tpu.matmul %35, %37, %cst_27 {dimension_numbers = #tpu.dot_dimension_numbers<[1], [0], [0], [1], [0, 0, 1, 1], [], []>} : vector<16x64xbf16>, vector<64x64xbf16>, vector<16x64xf32> -> vector<16x64xf32>
    %c4 = arith.constant 4 : index
    %c0_28 = arith.constant 0 : index
    %39 = vector.load %arg5[%c4, %c0_28] : memref<5x64xf32, #tpu.memory_space<vmem>>, vector<1x64xf32>
    %40 = vector.broadcast %39 : vector<1x64xf32> to vector<16x64xf32>
    %41 = arith.addf %38, %40 : vector<16x64xf32>
    %cst_29 = arith.constant 0.000000e+00 : f32
    %42 = vector.broadcast %cst_29 : f32 to vector<16x64xf32>
    %43 = arith.maximumf %41, %42 : vector<16x64xf32>
    %c0_30 = arith.constant 0 : index
    %c0_31 = arith.constant 0 : index
    %44 = vector.load %arg4[%c0_30, %c0_31] : memref<8x64xbf16, #tpu.memory_space<vmem>>, vector<8x64xbf16>
    %45 = arith.truncf %43 : vector<16x64xf32> to vector<16x64xbf16>
    %cst_32 = arith.constant dense<0.000000e+00> : vector<8x16xf32>
    %46 = tpu.matmul %44, %45, %cst_32 {dimension_numbers = #tpu.dot_dimension_numbers<[1], [1], [0], [0], [0, 0, 1, 0], [], []>} : vector<8x64xbf16>, vector<16x64xbf16>, vector<8x16xf32> -> vector<8x16xf32>
    %c0_33 = arith.constant 0 : index
    %c0_34 = arith.constant 0 : index
    %47 = vector.load %arg6[%c0_33, %c0_34] : memref<8x1xf32, #tpu.memory_space<vmem>>, vector<8x1xf32>
    %48 = vector.broadcast %47 : vector<8x1xf32> to vector<8x16xf32>
    %49 = arith.addf %46, %48 : vector<8x16xf32>
    %c0_35 = arith.constant 0 : index
    %c0_36 = arith.constant 0 : index
    %50 = vector.load %arg7[%c0_35, %c0_36] : memref<8x16xf32, #tpu.memory_space<vmem>>, vector<8x16xf32>
    tpu.vector_store %arg7[%c0_35, %c0_36], %49 {strides = array<i32>} : memref<8x16xf32, #tpu.memory_space<vmem>>, vector<8x16xf32>,
    return
  }
  func.func @transform_0(%arg0: i32) -> (i32, i32) {
    %c0_i32 = arith.constant 0 : i32
    %c0_i32_0 = arith.constant 0 : i32
    return %arg0, %c0_i32 : i32, i32
  }
  func.func @transform_1(%arg0: i32) -> (i32, i32) {
    %c0_i32 = arith.constant 0 : i32
    %c0_i32_0 = arith.constant 0 : i32
    %c0_i32_1 = arith.constant 0 : i32
    return %c0_i32, %c0_i32_0 : i32, i32
  }
  func.func @transform_2(%arg0: i32) -> (i32, i32, i32) {
    %c0_i32 = arith.constant 0 : i32
    %c0_i32_0 = arith.constant 0 : i32
    %c0_i32_1 = arith.constant 0 : i32
    %c0_i32_2 = arith.constant 0 : i32
    return %c0_i32, %c0_i32_0, %c0_i32_1 : i32, i32, i32
  }
  func.func @transform_3(%arg0: i32) -> (i32, i32) {
    %c0_i32 = arith.constant 0 : i32
    %c0_i32_0 = arith.constant 0 : i32
    %c0_i32_1 = arith.constant 0 : i32
    return %c0_i32, %c0_i32_0 : i32, i32
  }
  func.func @transform_4(%arg0: i32) -> (i32, i32) {
    %c0_i32 = arith.constant 0 : i32
    %c0_i32_0 = arith.constant 0 : i32
    %c0_i32_1 = arith.constant 0 : i32
    return %c0_i32, %c0_i32_0 : i32, i32
  }
  func.func @transform_5(%arg0: i32) -> (i32, i32) {
    %c0_i32 = arith.constant 0 : i32
    %c0_i32_0 = arith.constant 0 : i32
    %c0_i32_1 = arith.constant 0 : i32
    return %c0_i32, %c0_i32_0 : i32, i32
  }
  func.func @transform_6(%arg0: i32) -> (i32, i32) {
    %c0_i32 = arith.constant 0 : i32
    %c0_i32_0 = arith.constant 0 : i32
    return %c0_i32, %arg0 : i32, i32
  }
}

</mosaic_0001>

<bundles_post_ra>
// kernel: neural_network_forward.1
= control target key start
LH: loop header
LB: loop body
LE: loop exit
PB: predicated region body
PF: predicated region fallthrough
CT: control target
= control target key end

     0   :  { %11 = vsyncpa [#allocation3], 0  ;;  %s627_s0 = inlined_call_operand.vmem [shape: bf16[16,32], index: 0, kind: input, shape index: {}]   ;;  %s628_s1 = inlined_call_operand.vmem [shape: bf16[32,64], index: 1, kind: input, shape index: {}]   ;;  %s629_s2 = inlined_call_operand.hbm [shape: bf16[4,64,64], index: 2, kind: input, shape index: {}]   ;;  %s630_s3 = inlined_call_operand.hbm [shape: bf16[8,64], index: 3, kind: input, shape index: {}]   ;;  %s631_s4 = inlined_call_operand.hbm [shape: f32[5,64], index: 4, kind: input, shape index: {}]   ;;  %s632_s5 = inlined_call_operand.vmem [shape: f32[8,1], index: 5, kind: input, shape index: {}]   ;;  %s633_s6 = inlined_call_operand.vmem [shape: f32[8,16], index: 6, kind: output, shape index: {}]  }
   0x1   :  { %12 = vsyncpa [#allocation5], 0  ;;  %s35_s23 = sshll.u32 %s630_s3, 4  ;;  %s556_s24 = smov [#allocation4]   ;;  %s36_s23 = int_to_ptr.hbm [resolvable:$true] %s35_s23 }
   0x2   :  { %s37_s25 = sshll.u32 %s556_s24, 4  ;;  %s21_s28 = sshll.u32 %s629_s2, 4  ;;  %s38_s25 = int_to_ptr.vmem [resolvable:$true] %s37_s25  ;;  %s22_s28 = int_to_ptr.hbm [resolvable:$true] %s21_s28 }
   0x3   :  { %40 = dma.hbm_to_vmem [thread:$0]  %s36_s23, 64, %s38_s25, [#allocation5]  }
   0x4   :  { %s557_s29 = smov [#allocation2]   ;;  %s558_s7 = smov 64  }
   0x5   :  { %s23_s30 = sshll.u32 %s557_s29, 4  ;;  %s559_s8 = smov 4   ;;  %s24_s30 = int_to_ptr.vmem [resolvable:$true] %s23_s30 }
   0x6   :  { %29 = dma.hbm_to_vmem [thread:$0]  %s22_s28, 2048, %s24_s30, [#allocation3], %s558_s7, %s558_s7, %s559_s8  }
   0x7   :  { %s46_s3 = sshll.u32 %s631_s4, 4  ;;  %s560_s11 = smov [#allocation6]   ;;  %s47_s3 = int_to_ptr.hbm [resolvable:$true] %s46_s3 }
   0x8   :  { %s48_s12 = sshll.u32 %s560_s11, 4  ;;  %s49_s12 = int_to_ptr.vmem [resolvable:$true] %s48_s12 }
   0x9   :  { %51 = dma.hbm_to_vmem [thread:$0]  %s47_s3, 128, %s49_s12, [#allocation5]  }
   0xa   :  { %552 = dma.done.wait [#allocation3], 2048  }
   0xb   :  { %553 = vsyncadd [#allocation3], 4294965248 }
   0xc   :  { %554 = dma.done.wait [#allocation5], 192  }
   0xd   :  { %555 = vsyncadd [#allocation5], 4294967104  ;;  %v451_v0 = vld [vmem:[%s628_s1 + $0x8] sm:$0xff]  ;;  %v450_v1 = vld [vmem:[%s628_s1] sm:$0xff]  ;;  %vm92_vm0 = vcmask 261120   ;;  %vm147_vm1 = vcmask 523264  }
   0xe   :  { %102 = vmatpush.bf16.msra.mxu0 %v451_v0  ;;  %v449_v2 = vld [vmem:[%s627_s0] sm:$0xff]  ;;  %v455_v3 = vld [vmem:[#allocation2 + $0x18] sm:$0xff]  ;;  %v454_v4 = vld [vmem:[#allocation2 + $0x10] sm:$0xff]  ;;  %v561_v52 = vmov 0   ;;  %vm359_vm2 = vcmask 130048  }
   0xf   :  { %155 = vmatpush.bf16.msra.mxu1 %v455_v3  ;;  %v453_v5 = vld [vmem:[#allocation2 + $0x8] sm:$0xff]  ;;  %v452_v6 = vld [vmem:[#allocation2] sm:$0xff]  ;;  %v459_v15 = vld [vmem:[#allocation2 + $0x38] sm:$0xff]  ;;  %474 = vset.pattern.permute.xlu0 %v561_v52 }
  0x10   :  { %v475_v8 = vld [vmem:[#allocation6] ss:$0 sm:$0xff]  ;;  %210 = vmatpush.bf16.msra.mxu2 %v459_v15  ;;  %v458_v16 = vld [vmem:[#allocation2 + $0x30] sm:$0xff]  ;;  %v457_v17 = vld [vmem:[#allocation2 + $0x28] sm:$0xff] }
  0x11   :  { %v456_v18 = vld [vmem:[#allocation2 + $0x20] sm:$0xff]  ;;  %v463_v27 = vld [vmem:[#allocation2 + $0x58] sm:$0xff]  ;;  %v462_v28 = vld [vmem:[#allocation2 + $0x50] sm:$0xff] }
  0x12   :  { %103 = vmatpush.bf16.msra.mxu0 %v450_v1  ;;  %v476_v20 = vld [vmem:[#allocation6 + $0x1] ss:$0 sm:$0xff]  ;;  %265 = vmatpush.bf16.msra.mxu3 %v463_v27  ;;  %v461_v29 = vld [vmem:[#allocation2 + $0x48] sm:$0xff]  ;;  %v477_v32 = vld [vmem:[#allocation6 + $0x2] ss:$0 sm:$0xff] }
  0x13   :  { %156 = vmatpush.bf16.msra.mxu1 %v454_v4  ;;  %v460_v30 = vld [vmem:[#allocation2 + $0x40] sm:$0xff]  ;;  %v467_v39 = vld [vmem:[#allocation2 + $0x78] sm:$0xff]  ;;  %v466_v40 = vld [vmem:[#allocation2 + $0x70] sm:$0xff] }
  0x14   :  { %211 = vmatpush.bf16.msra.mxu2 %v458_v16  ;;  %v465_v41 = vld [vmem:[#allocation2 + $0x68] sm:$0xff]  ;;  %v464_v42 = vld [vmem:[#allocation2 + $0x60] sm:$0xff] }
  0x15   :  { %379 = vmatmul.msk.bf16.vlgmr.msra.gmra.mxu0 %vm92_vm0, %v449_v2  ;;  %v478_v44 = vld [vmem:[#allocation6 + $0x3] ss:$0 sm:$0xff]  ;;  %v479_v54 = vld [vmem:[#allocation6 + $0x4] ss:$0 sm:$0xff]  ;;  %v332_v62 = vld [vmem:[#allocation4] sm:$0xf] }
  0x16   :  { %266 = vmatpush.bf16.msra.mxu3 %v462_v28  ;;  %320 = vmatpush.bf16.msrb.mxu0 %v467_v39  ;;  %v334_v51 = vld [vmem:[%s632_s5] sm:$0xff] }
  0x17   :  { %157 = vmatpush.bf16.msra.mxu1 %v453_v5  ;;  %337 = vperm.xlu0 %474, %v334_v51  }
  0x18   :  { %212 = vmatpush.bf16.msra.mxu2 %v457_v17 }
  0x1a   :  { %267 = vmatpush.bf16.msra.mxu3 %v461_v29  ;;  %321 = vmatpush.bf16.msrb.mxu0 %v466_v40 }
  0x1b   :  { %158 = vmatpush.bf16.msra.mxu1 %v452_v6 }
  0x1c   :  { %213 = vmatpush.bf16.msra.mxu2 %v456_v18 }
  0x1e   :  { %268 = vmatpush.bf16.msra.mxu3 %v460_v30  ;;  %322 = vmatpush.bf16.msrb.mxu0 %v465_v41 }
  0x22   :  { %323 = vmatpush.bf16.msrb.mxu0 %v464_v42 }
  0x89   :  { %v338_v63 = vpop.permute.xlu0 %337 }
  0x92   :  { %v105_v7 = vpop.f32.mrf.mxu0 }
  0x93   :  { %v106_v9 = vadd.f32 %v475_v8, %v105_v7 }
  0x95   :  { %v110_v12 = vmax.f32 %v106_v9, 0.0 }
  0x9a   :  { %v107_v10 = vpop.f32.mrf.mxu0 }
  0x9b   :  { %v108_v11 = vadd.f32 %v475_v8, %v107_v10 }
  0x9d   :  { %v111_v13 = vmax.f32 %v108_v11, 0.0 }
  0x9f   :  { %v112_v14 = vpack.c.bf16 %v111_v13, %v110_v12 }
  0xa1   :  { %396 = vmatmul.msk.bf16.vlgmr.msra.gmra.mxu1 %vm147_vm1, %v112_v14 }
 0x11e   :  { %v160_v19 = vpop.f32.mrf.mxu1 }
 0x11f   :  { %v161_v21 = vadd.f32 %v476_v20, %v160_v19 }
 0x121   :  { %v165_v24 = vmax.f32 %v161_v21, 0.0 }
 0x126   :  { %v162_v22 = vpop.f32.mrf.mxu1 }
 0x127   :  { %v163_v23 = vadd.f32 %v476_v20, %v162_v22 }
 0x129   :  { %v166_v25 = vmax.f32 %v163_v23, 0.0 }
 0x12b   :  { %v167_v26 = vpack.c.bf16 %v166_v25, %v165_v24 }
 0x12d   :  { %413 = vmatmul.msk.bf16.vlgmr.msra.gmra.mxu2 %vm147_vm1, %v167_v26 }
 0x1b0   :  { %v215_v31 = vpop.f32.mrf.mxu2 }
 0x1b1   :  { %v216_v33 = vadd.f32 %v477_v32, %v215_v31 }
 0x1b3   :  { %v220_v36 = vmax.f32 %v216_v33, 0.0 }
 0x1b8   :  { %v217_v34 = vpop.f32.mrf.mxu2 }
 0x1b9   :  { %v218_v35 = vadd.f32 %v477_v32, %v217_v34 }
 0x1bb   :  { %v221_v37 = vmax.f32 %v218_v35, 0.0 }
 0x1bd   :  { %v222_v38 = vpack.c.bf16 %v221_v37, %v220_v36 }
 0x1bf   :  { %430 = vmatmul.msk.bf16.vlgmr.msra.gmra.mxu3 %vm147_vm1, %v222_v38 }
 0x242   :  { %v270_v43 = vpop.f32.mrf.mxu3 }
 0x243   :  { %v271_v45 = vadd.f32 %v478_v44, %v270_v43 }
 0x245   :  { %v275_v48 = vmax.f32 %v271_v45, 0.0 }
 0x24a   :  { %v272_v46 = vpop.f32.mrf.mxu3 }
 0x24b   :  { %v273_v47 = vadd.f32 %v478_v44, %v272_v46 }
 0x24d   :  { %v276_v49 = vmax.f32 %v273_v47, 0.0 }
 0x24f   :  { %v277_v50 = vpack.c.bf16 %v276_v49, %v275_v48 }
 0x251   :  { %447 = vmatmul.msk.bf16.vlgmr.msrb.gmra.mxu0 %vm147_vm1, %v277_v50 }
 0x2ce   :  { %v325_v53 = vpop.f32.mrf.mxu0 }
 0x2cf   :  { %v326_v55 = vadd.f32 %v479_v54, %v325_v53 }
 0x2d1   :  { %v330_v58 = vmax.f32 %v326_v55, 0.0 }
 0x2d6   :  { %v327_v56 = vpop.f32.mrf.mxu0 }
 0x2d7   :  { %v328_v57 = vadd.f32 %v479_v54, %v327_v56 }
 0x2d9   :  { %v331_v59 = vmax.f32 %v328_v57, 0.0 }
 0x2db   :  { %v333_v60 = vpack.c.bf16 %v331_v59, %v330_v58 }
 0x2dd   :  { %v344_v61 = vsel %vm147_vm1, %v333_v60, 0 }
 0x2de   :  { %353 = vmatpush.bf16.xpose.msrb.mxu1 %v344_v61 }
 0x2e5   :  { %448 = vmatmul.msk.bf16.vlgmr.msrb.gmra.mxu1 %vm147_vm1, %v332_v62 }
 0x362   :  { %v355_v0 = vpop.f32.mrf.mxu1 }
 0x363   :  { %v356_v1 = vadd.f32 %v355_v0, %v338_v63 }
 0x365   :  { %360 = vst.msk [vmem:[%s633_s6] sm:$0xff] %vm359_vm2, %v356_v1 }
 0x36a   :  { %v357_v2 = vpop.f32.mrf.mxu1 }
 0x36b   :  { %365 = vsyncpa [#allocation3], 1 }
 0x36c   :  { %366 = vsyncpa [#allocation5], 1 }

</bundles_post_ra>
